<compile_context>
chip_gen: v7x
topology: tpu7x:2x2x1
jax: 0.10.0
libtpu: 0.0.40
codegen_flags: <defaults>
</compile_context>

<pallas_src>
import jax
import jax.numpy as jnp
from jax.experimental import pallas as pl
from jax.experimental.pallas import tpu as pltpu

LANE = 128


def _make_mse_partial_kernel(rows, tile_rows, steps_per_split, lane,
                             needs_mask, acc_rows):
    def _tile_ssq(x_ref, t_ref, row_mask):
        d = x_ref[...].astype(jnp.float32) - t_ref[...].astype(jnp.float32)
        sq = d * d
        if row_mask is not None:
            # Select (NOT multiply-by-mask): garbage NaN/Inf in masked-off rows
            # must not poison the sum.
            sq = jnp.where(row_mask, sq, 0.0)
        if acc_rows == 8:
            # Reduce only down to 8 sublanes (one vreg worth of partials): pure
            # per-vreg VPU adds, no in-tile cross-sublane reduce.  The final
            # reduce is done by the wrapper.
            return jnp.sum(sq.reshape(tile_rows // 8, 8, lane), axis=0)
        return jnp.sum(sq, axis=0, keepdims=True)

    def kernel(x_ref, t_ref, acc_ref):
        s = pl.program_id(0)   # parallel split axis (both TCs on 2-core chips)
        i = pl.program_id(1)   # arbitrary (sequential) reduction axis

        @pl.when(i == 0)
        def _():
            acc_ref[...] = jnp.zeros_like(acc_ref)

        if not needs_mask:
            # Fully aligned tiling: no mask work anywhere.
            acc_ref[...] += _tile_ssq(x_ref, t_ref, None)[None]
        else:
            # Nominal (unclamped) block index of this grid step.  The index_map
            # clamps the actual fetch so the DMA never starts past the array;
            # the mask below is computed from the *nominal* index so ragged or
            # duplicated rows contribute exactly zero.
            nominal = s * steps_per_split + i
            row0 = nominal * tile_rows

            @pl.when(row0 + tile_rows <= rows)
            def _():
                # Interior block: unmasked hot path (no iota/compare/select).
                acc_ref[...] += _tile_ssq(x_ref, t_ref, None)[None]

            @pl.when(row0 + tile_rows > rows)
            def _():
                # Ragged last block / clamped duplicate block.
                local = jax.lax.broadcasted_iota(jnp.int32, (tile_rows, lane), 0)
                valid = (row0 + local) < rows
                acc_ref[...] += _tile_ssq(x_ref, t_ref, valid)[None]

    return kernel


def _tensorcores_per_device():
    """Best-effort TensorCore count per device (2 on v4/v5p/v7x, else 1)."""
    try:
        dev = jax.devices()[0]
        kind = (getattr(dev, "device_kind", "") or "").lower()
        if any(tag in kind for tag in ("v4", "v5p", "v7", "7x")):
            return 2
        n = getattr(dev, "num_cores", None)
        if isinstance(n, int) and n >= 1:
            return n
    except Exception:
        pass
    return 1


def content_loss_forward(x, target, *, tile_bytes=6 * 1024 * 1024, num_splits=None):
    """ContentLoss.forward: returns (input_unchanged, mse_loss(input, target))."""
    assert x.shape == target.shape, "input/target shape mismatch"
    n_elem = x.size
    lane = LANE
    itemsize = jnp.dtype(x.dtype).itemsize

    # Flatten in native dtype; reshape to (rows, 128) is zero-copy when aligned.
    xf = x.reshape(-1)
    tf = target.reshape(-1)
    rows = n_elem // lane
    rem = n_elem % lane

    if rem:
        # <=127-element lane remainder: tiny plain-JAX reduction over just the
        # tail slice, added to the kernel's partial sums (no full-array jnp.pad).
        tail = jnp.sum((xf[rows * lane:].astype(jnp.float32)
                        - tf[rows * lane:].astype(jnp.float32)) ** 2)
        if rows:
            # NOTE: XLA may materialize this prefix slice for non-lane-aligned
            # sizes; lane-aligned inputs (the common case for NCHW feature
            # maps) take the fully zero-copy reshape path above/below.
            xf = jax.lax.slice(xf, (0,), (rows * lane,))
            tf = jax.lax.slice(tf, (0,), (rows * lane,))
    else:
        tail = jnp.float32(0.0)

    if rows == 0:
        # Entire tensor fits in the tail path.
        return x, tail / jnp.float32(n_elem)

    x2 = xf.reshape(rows, lane)
    t2 = tf.reshape(rows, lane)

    # Dtype-aware tile sizing: ~tile_bytes per input block, rounded down to the
    # dtype's sublane multiple (8 for f32, 16 for bf16, 32 for 8-bit types).
    sub = max(8, 32 // itemsize)
    max_rows = max(sub, (tile_bytes // (lane * itemsize)) // sub * sub)

    if num_splits is None:
        num_splits = _tensorcores_per_device()

    if rows <= max_rows:
        tile_rows, total_steps, splits = rows, 1, 1
    else:
        steps0 = pl.cdiv(rows, max_rows)
        splits = max(1, min(num_splits, steps0))
        # Round the step count up to a multiple of the split count so every
        # split runs the same trip count (no clamped duplicate on the split
        # boundary) and re-derive a (slightly smaller) tile that still covers
        # all rows.
        total_steps = splits * pl.cdiv(steps0, splits)
        base = pl.cdiv(rows, total_steps)
        tile_rows = pl.cdiv(base, sub) * sub          # <= max_rows by construction
    steps_per_split = total_steps // splits

    needs_mask = (tile_rows * total_steps != rows)
    acc_rows = 8 if (tile_rows % 8 == 0) else 1
    last_block = pl.cdiv(rows, tile_rows) - 1

    kernel = _make_mse_partial_kernel(rows, tile_rows, steps_per_split, lane,
                                      needs_mask, acc_rows)

    def in_map(s, i):
        # Clamp so a fetched block never starts past the array end; the kernel's
        # nominal-index mask zeroes out clamped / ragged rows.
        return (jnp.minimum(s * steps_per_split + i, last_block), 0)

    cost = pl.CostEstimate(
        flops=3 * rows * lane,
        transcendentals=0,
        bytes_accessed=2 * rows * lane * itemsize + splits * acc_rows * lane * 4,
    )

    partials = pl.pallas_call(
        kernel,
        out_shape=jax.ShapeDtypeStruct((splits, acc_rows, lane), jnp.float32),
        grid_spec=pltpu.PrefetchScalarGridSpec(
            num_scalar_prefetch=0,
            grid=(splits, steps_per_split),
            in_specs=[
                pl.BlockSpec((tile_rows, lane), in_map),
                pl.BlockSpec((tile_rows, lane), in_map),
            ],
            out_specs=pl.BlockSpec((1, acc_rows, lane), lambda s, i: (s, 0, 0)),
        ),
        compiler_params=pltpu.CompilerParams(
            # If a v7x profile shows only one TC active on the split axis,
            # switch the leading axis to pltpu.CORE_PARALLEL.
            dimension_semantics=("parallel", "arbitrary"),
            # 2 inputs x 2 pipeline buffers x ~6 MiB = ~24 MiB; 48 MiB leaves
            # headroom for compiler temporaries and fits v7x's 64 MiB VMEM.
            vmem_limit_bytes=48 * 1024 * 1024,
        ),
        cost_estimate=cost,
    )(x2, t2)

    loss = (jnp.sum(partials, dtype=jnp.float32) + tail) / jnp.float32(n_elem)
    # TODO(synk): nn.Module stores self.loss as mutable state; here it is
    # returned as a second output instead (input is returned unchanged).
    return x, loss


if __name__ == "__main__":
    key = jax.random.PRNGKey(0)
    k_in, k_tgt = jax.random.split(key)

    # Small NCHW feature-map-like shapes (batch=2, channels=4, spatial=16x16).
    shape = (2, 4, 16, 16)
    x = jax.random.normal(k_in, shape, dtype=jnp.float32)
    target = jax.random.normal(k_tgt, shape, dtype=jnp.float32)

    out, loss = content_loss_forward(x, target)
    out = jax.block_until_ready(out)
    loss = jax.block_until_ready(loss)

    # Reference check (plain JAX mean-squared-error) + passthrough check.
    ref_loss = jnp.mean((x - target) ** 2)
    assert jnp.allclose(loss, ref_loss, rtol=1e-5, atol=1e-6), (loss, ref_loss)
    assert jnp.array_equal(out, x)

    print("KERNEL_OK")
</pallas_src>

<mosaic_0001>
module attributes {stable_mosaic.version = 11 : i64} {
  func.func @kernel(%arg0: i32, %arg1: i32, %arg2: memref<16x128xf32, #tpu.memory_space<vmem>>, %arg3: memref<16x128xf32, #tpu.memory_space<vmem>>, %arg4: memref<1x8x128xf32, #tpu.memory_space<vmem>>) attributes {dimension_semantics = [#tpu.dimension_semantics<parallel>, #tpu.dimension_semantics<arbitrary>], iteration_bounds = array<i64: 1, 1>, scalar_prefetch = 0 : i64, scratch_operands = 0 : i64, tpu.core_type = #tpu.core_type<tc>, window_params = [{transform_indices = @transform_0, window_bounds = array<i64: 16, 128>}, {transform_indices = @transform_1, window_bounds = array<i64: 16, 128>}, {transform_indices = @transform_2, window_bounds = array<i64: 1, 8, 128>}]} {
    %c0_i32 = arith.constant 0 : i32
    %0 = arith.cmpi eq, %arg1, %c0_i32 : i32
    %1 = arith.extui %0 : i1 to i32
    %c0_i32_0 = arith.constant 0 : i32
    %2 = arith.cmpi ne, %1, %c0_i32_0 : i32
    scf.if %2 {
      %cst_10 = arith.constant 0.000000e+00 : f32
      %13 = vector.broadcast %cst_10 : f32 to vector<1x8x128xf32>
      %c0_11 = arith.constant 0 : index
      %c0_12 = arith.constant 0 : index
      %c0_13 = arith.constant 0 : index
      %14 = vector.load %arg4[%c0_11, %c0_12, %c0_13] : memref<1x8x128xf32, #tpu.memory_space<vmem>>, vector<1x8x128xf32>
      tpu.vector_store %arg4[%c0_11, %c0_12, %c0_13], %13 {strides = array<i32>} : memref<1x8x128xf32, #tpu.memory_space<vmem>>, vector<1x8x128xf32>,
    } else {
    }
    %c0 = arith.constant 0 : index
    %c0_1 = arith.constant 0 : index
    %c0_2 = arith.constant 0 : index
    %3 = vector.load %arg4[%c0, %c0_1, %c0_2] : memref<1x8x128xf32, #tpu.memory_space<vmem>>, vector<1x8x128xf32>
    %c0_3 = arith.constant 0 : index
    %c0_4 = arith.constant 0 : index
    %4 = vector.load %arg2[%c0_3, %c0_4] : memref<16x128xf32, #tpu.memory_space<vmem>>, vector<16x128xf32>
    %c0_5 = arith.constant 0 : index
    %c0_6 = arith.constant 0 : index
    %5 = vector.load %arg3[%c0_5, %c0_6] : memref<16x128xf32, #tpu.memory_space<vmem>>, vector<16x128xf32>
    %6 = arith.subf %4, %5 : vector<16x128xf32>
    %7 = arith.mulf %6, %6 : vector<16x128xf32>
    %8 = vector.shape_cast %7 : vector<16x128xf32> to vector<2x8x128xf32>
    %cst = arith.constant dense<0.000000e+00> : vector<8x128xf32>
    %9 = vector.multi_reduction <add>, %8, %cst [0] : vector<2x8x128xf32> to vector<8x128xf32>
    %10 = vector.shape_cast %9 : vector<8x128xf32> to vector<1x8x128xf32>
    %11 = arith.addf %3, %10 : vector<1x8x128xf32>
    %c0_7 = arith.constant 0 : index
    %c0_8 = arith.constant 0 : index
    %c0_9 = arith.constant 0 : index
    %12 = vector.load %arg4[%c0_7, %c0_8, %c0_9] : memref<1x8x128xf32, #tpu.memory_space<vmem>>, vector<1x8x128xf32>
    tpu.vector_store %arg4[%c0_7, %c0_8, %c0_9], %11 {strides = array<i32>} : memref<1x8x128xf32, #tpu.memory_space<vmem>>, vector<1x8x128xf32>,
    return
  }
  func.func @transform_0(%arg0: i32, %arg1: i32) -> (i32, i32) {
    %c1_i32 = arith.constant 1 : i32
    %0 = arith.muli %arg0, %c1_i32 : i32
    %1 = arith.addi %0, %arg1 : i32
    %c0_i32 = arith.constant 0 : i32
    %2 = arith.minsi %1, %c0_i32 : i32
    %c0_i32_0 = arith.constant 0 : i32
    %c0_i32_1 = arith.constant 0 : i32
    return %2, %c0_i32_0 : i32, i32
  }
  func.func @transform_1(%arg0: i32, %arg1: i32) -> (i32, i32) {
    %c1_i32 = arith.constant 1 : i32
    %0 = arith.muli %arg0, %c1_i32 : i32
    %1 = arith.addi %0, %arg1 : i32
    %c0_i32 = arith.constant 0 : i32
    %2 = arith.minsi %1, %c0_i32 : i32
    %c0_i32_0 = arith.constant 0 : i32
    %c0_i32_1 = arith.constant 0 : i32
    return %2, %c0_i32_0 : i32, i32
  }
  func.func @transform_2(%arg0: i32, %arg1: i32) -> (i32, i32, i32) {
    %c0_i32 = arith.constant 0 : i32
    %c0_i32_0 = arith.constant 0 : i32
    %c0_i32_1 = arith.constant 0 : i32
    return %arg0, %c0_i32, %c0_i32_0 : i32, i32, i32
  }
}

</mosaic_0001>

<bundles_post_ra>
// kernel: tpu_custom_call.1
= control target key start
LH: loop header
LB: loop body
LE: loop exit
PB: predicated region body
PF: predicated region fallthrough
CT: control target
= control target key end

     0   :  { %7 = vsyncpa [#allocation3], 0  ;;  %s231_s0 = inlined_call_operand.hbm [shape: f32[16,128], index: 0, kind: input, shape index: {}]   ;;  %s232_s1 = inlined_call_operand.hbm [shape: f32[16,128], index: 1, kind: input, shape index: {}]   ;;  %s233_s2 = inlined_call_operand.hbm [shape: f32[1,8,128], index: 2, kind: output, shape index: {}]  }
   0x1   :  { %8 = vsyncpa [#allocation6], 0 }
   0x2   :  { %9 = vsyncpa [#allocation4], 0  ;;  %s175_s9 = smov [#allocation2]   ;;  %s103_s13 = scalar_lea.hbm %s231_s0, 256 }
   0x3   :  { %s21_s10 = sshll.u32 %s175_s9, 4  ;;  %p104_p0 = scmp.ne.s32.totalorder %s231_s0, %s103_s13  ;;  %s22_s10 = int_to_ptr.vmem [resolvable:$true] %s21_s10 }
   0x4   :  { %p107_p1 = scmp.lt.u32.totalorder %s103_s13, %s231_s0 }
   0x6   :  { %p109_p2 = pnand %p107_p1, %p104_p0 }
   0x8   :  { %112 = shalt.err (!%p109_p2)
}
   0x9   :  { %s113_s18 = scalar_lea.vmem %s22_s10, 256  ;;  %p118_p4 = scmp.lt.s32.totalorder %s22_s10, %s22_s10 }
   0xa   :  { %p114_p3 = scmp.ne.s32.totalorder %s22_s10, %s113_s18  ;;  %p119_p5 = scmp.lt.s32.totalorder %s113_s18, %s113_s18 }
   0xc   :  { %p120_p6 = por %p119_p5, %p118_p4 }
   0xe   :  { %p121_p7 = pnand %p120_p6, %p114_p3 }
  0x10   :  { %124 = shalt.err (!%p121_p7)
}
  0x11   :  { %s176_s19 = smov 128   ;;  %s177_s20 = smov 8  }
  0x12   :  { %27 = dma.hbm_to_vmem [thread:$0]  %s231_s0, 256, %s22_s10, [#allocation3], %s176_s19, %s176_s19, %s177_s20  }
  0x13   :  { %s178_s23 = smov [#allocation5]   ;;  %s125_s27 = scalar_lea.hbm %s232_s1, 256 }
  0x14   :  { %s39_s24 = sshll.u32 %s178_s23, 4  ;;  %p126_p8 = scmp.ne.s32.totalorder %s232_s1, %s125_s27  ;;  %s40_s24 = int_to_ptr.vmem [resolvable:$true] %s39_s24 }
  0x15   :  { %p129_p9 = scmp.lt.u32.totalorder %s125_s27, %s232_s1 }
  0x17   :  { %p131_p10 = pnand %p129_p9, %p126_p8 }
  0x19   :  { %134 = shalt.err (!%p131_p10)
}
  0x1a   :  { %s135_s4 = scalar_lea.vmem %s40_s24, 256  ;;  %p140_p12 = scmp.lt.s32.totalorder %s40_s24, %s40_s24 }
  0x1b   :  { %p136_p11 = scmp.ne.s32.totalorder %s40_s24, %s135_s4  ;;  %p141_p13 = scmp.lt.s32.totalorder %s135_s4, %s135_s4 }
  0x1d   :  { %p142_p0 = por %p141_p13, %p140_p12 }
  0x1f   :  { %p143_p1 = pnand %p142_p0, %p136_p11 }
  0x21   :  { %146 = shalt.err (!%p143_p1)
}
  0x22   :  { %45 = dma.hbm_to_vmem [thread:$0]  %s232_s1, 256, %s40_s24, [#allocation6], %s176_s19, %s176_s19, %s177_s20  }
  0x23   :  { %169 = dma.done.wait [#allocation3], 256  }
  0x24   :  { %170 = vsyncadd [#allocation3], 4294967040 }
  0x25   :  { %171 = dma.done.wait [#allocation6], 256  }
  0x26   :  { %172 = vsyncadd [#allocation6], 4294967040  ;;  %v66_v0 = vld [vmem:[#allocation2] sm:$0xff]  ;;  %v67_v1 = vld [vmem:[#allocation2 + $0x8] sm:$0xff]  ;;  %s179_s6 = smov [#allocation7]  }
  0x27   :  { %v68_v2 = vld [vmem:[#allocation5] sm:$0xff]  ;;  %v69_v3 = vld [vmem:[#allocation5 + $0x8] sm:$0xff]  ;;  %s83_s7 = sshll.u32 %s179_s6, 4  ;;  %s84_s7 = int_to_ptr.vmem [resolvable:$true] %s83_s7 }
  0x28   :  { %v70_v4 = vsub.f32 %v66_v0, %v68_v2  ;;  %v71_v5 = vsub.f32 %v67_v1, %v69_v3  ;;  %s147_s8 = scalar_lea.vmem %s84_s7, 128  ;;  %p152_p3 = scmp.lt.s32.totalorder %s84_s7, %s84_s7 }
  0x29   :  { %p148_p2 = scmp.ne.s32.totalorder %s84_s7, %s147_s8  ;;  %p153_p4 = scmp.lt.s32.totalorder %s147_s8, %s147_s8 }
  0x2a   :  { %v72_v6 = vmul.f32 %v70_v4, %v70_v4  ;;  %v73_v7 = vmul.f32 %v71_v5, %v71_v5 }
  0x2b   :  { %p154_p5 = por %p153_p4, %p152_p3 }
  0x2c   :  { %v74_v8 = vadd.f32 %v73_v7, %v72_v6 }
  0x2d   :  { %p155_p6 = pnand %p154_p5, %p148_p2 }
  0x2e   :  { %76 = vst [vmem:[#allocation7] sm:$0xff] %v74_v8 }
  0x2f   :  { %158 = shalt.err (!%p155_p6)
}
  0x30   :  { %s159_s10 = scalar_lea.hbm %s233_s2, 128 }
  0x31   :  { %p160_p7 = scmp.ne.s32.totalorder %s233_s2, %s159_s10  ;;  %p163_p8 = scmp.lt.u32.totalorder %s159_s10, %s233_s2 }
  0x33   :  { %p165_p9 = pnand %p163_p8, %p160_p7 }
  0x35   :  { %168 = shalt.err (!%p165_p9)
}
  0x36   :  { %86 = dma.vmem_to_hbm [thread:$0]  %s84_s7, 128, %s233_s2, [#allocation4]  }
  0x37   :  { %173 = dma.done.wait [#allocation4], 128  }
  0x38   :  { %174 = vsyncadd [#allocation4], 4294967168 }
  0x39   :  { %90 = vsyncpa [#allocation3], 1 }
  0x3a   :  { %91 = vsyncpa [#allocation6], 1 }
  0x3b   :  { %92 = vsyncpa [#allocation4], 1 }

</bundles_post_ra>
